<compile_context>
chip_gen: v7x
topology: tpu7x:2x2x1
jax: 0.10.0
libtpu: 0.0.40
codegen_flags: <defaults>
</compile_context>

<pallas_src>
import functools
import math

import jax
import jax.numpy as jnp
from jax.experimental import pallas as pl
from jax.experimental.pallas import tpu as pltpu

_VMEM_LIMIT = 32 * 1024 * 1024  # safe scoped limit on v5e/v6e/v7x


def _softplus(x):
    # matches torch.nn.functional.softplus(x, beta=1, threshold=20)
    return jnp.where(x > 20.0, x, jnp.log1p(jnp.exp(jnp.minimum(x, 20.0))))


def _fit_tile(n, target, quantum):
    """Largest multiple of `quantum` <= target that divides n, else n (full)."""
    if n <= target:
        return n
    t = (target // quantum) * quantum
    while t >= quantum:
        if n % t == 0:
            return t
        t -= quantum
    return n


# --------------------------- tiled matmul kernels -----------------------------

def _matmul_kernel_inplace(a_ref, b_ref, o_ref):
    """f32 output: accumulate straight into the resident output block."""
    @pl.when(pl.program_id(1) == 0)
    def _():
        o_ref[...] = jnp.zeros_like(o_ref)

    o_ref[...] += jnp.dot(a_ref[...], b_ref[...],
                          preferred_element_type=jnp.float32)


def _matmul_kernel_acc(a_ref, b_ref, o_ref, acc_ref):
    """Narrow output dtype: f32 scratch accumulator, cast on the last k step."""
    @pl.when(pl.program_id(1) == 0)
    def _():
        acc_ref[...] = jnp.zeros_like(acc_ref)

    acc_ref[...] += jnp.dot(a_ref[...], b_ref[...],
                            preferred_element_type=jnp.float32)

    @pl.when(pl.program_id(1) == pl.num_programs(1) - 1)
    def _():
        o_ref[...] = acc_ref[...].astype(o_ref.dtype)


def pallas_matmul(a, b, *, out_dtype=jnp.float32, tm=1024, tk=2048):
    """out = bf16(a) @ bf16(b), f32 accumulation, tiled (rows of a) x (K)."""
    m, k = a.shape
    k2, n = b.shape
    assert k == k2
    # bf16 packs 2 rows per sublane -> keep tm a multiple of 16.
    tm = _fit_tile(m, tm, 16)
    # Keep >=2 row tiles when possible so the "parallel" axis can split across
    # both v7x TensorCores (no measurable effect on single-TC v5e/v6e).
    if m // tm < 2 and m >= 32:
        tm = _fit_tile(m, max(16, m // 2), 16)
    tk = _fit_tile(k, tk, 128)

    a = a.astype(jnp.bfloat16)
    b = b.astype(jnp.bfloat16)

    out_is_f32 = jnp.dtype(out_dtype) == jnp.dtype(jnp.float32)
    kernel = _matmul_kernel_inplace if out_is_f32 else _matmul_kernel_acc
    scratch = [] if out_is_f32 else [pltpu.VMEM((tm, n), jnp.float32)]

    # TODO(synk): optional resident full-K RHS (v5e/v6e, 128 MiB VMEM) would
    # remove the per-row-tile re-stream of B; skipped to keep v7x-safe.
    return pl.pallas_call(
        kernel,
        out_shape=jax.ShapeDtypeStruct((m, n), out_dtype),
        grid_spec=pltpu.PrefetchScalarGridSpec(
            num_scalar_prefetch=0,
            grid=(m // tm, k // tk),
            in_specs=[pl.BlockSpec((tm, tk), lambda i, j: (i, j)),
                      pl.BlockSpec((tk, n), lambda i, j: (j, 0))],
            out_specs=pl.BlockSpec((tm, n), lambda i, j: (i, 0)),
            scratch_shapes=scratch),
        compiler_params=pltpu.CompilerParams(
            dimension_semantics=("parallel", "arbitrary"),
            vmem_limit_bytes=_VMEM_LIMIT),
    )(a, b)


def gcn_aggregate(graph_bf16, emb, num_layers, *, tm, tk):
    """aggregate(): L rounds of A @ E (bf16 intermediates), mean over layers in f32."""
    e = emb.astype(jnp.bfloat16)
    acc = jnp.zeros(emb.shape, jnp.float32)
    for _ in range(num_layers):
        e = pallas_matmul(graph_bf16, e, out_dtype=jnp.bfloat16, tm=tm, tk=tk)
        acc = acc + e.astype(jnp.float32)
    return acc / float(num_layers)


def hete_embed(g_bf16, x, w, *, tm, tk):
    """Autoencoder stand-in: g @ (x @ w); x @ w computed once, emitted bf16."""
    h = pallas_matmul(x, w, out_dtype=jnp.bfloat16, tm=tm, tk=tk)
    return pallas_matmul(g_bf16, h, out_dtype=jnp.float32, tm=tm, tk=tk)


# --------------------------- IB compressor + KL kernel -----------------------

def _compress_kl_kernel(h0_ref, h1_ref, w_ref, b_ref, out_ref, *, ib2):
    @pl.when(pl.program_id(0) == 0)
    def _():
        out_ref[...] = jnp.zeros_like(out_ref)

    node = 0.5 * (h0_ref[...] + h1_ref[...])
    # One lane-wide compressor matmul; mu/std separated by a lane mask instead
    # of sub-128 lane slicing.
    z = jnp.dot(node, w_ref[...], preferred_element_type=jnp.float32) + b_ref[...]
    lane = jax.lax.broadcasted_iota(jnp.int32, z.shape, 1)
    is_mu = lane < ib2

    mu_sq_sum = jnp.sum(jnp.where(is_mu, z * z, 0.0))
    pre = jnp.where(is_mu, 0.0, z - float(ib2))
    std = _softplus(pre)
    std_sum = jnp.sum(jnp.where(is_mu, 0.0, 2.0 * jnp.log(std) - std * std))

    rows = h0_ref.shape[0]
    # per row: -0.5 * sum_j (1 + 2 log std_j - mu_j^2 - std_j^2)
    part = -0.5 * (float(ib2 * rows) + std_sum - mu_sq_sum)
    out_ref[...] = out_ref[...] + part


def compress_kl(h0, h1, w, b, ib2, *, tm=1024):
    """mean of hetero views -> Linear(dim, IB) -> split mu/std -> KL (in bits)."""
    n, d = h0.shape
    ib_size = w.shape[1]
    tm = _fit_tile(n, tm, 8)
    raw = pl.pallas_call(
        functools.partial(_compress_kl_kernel, ib2=int(ib2)),
        out_shape=jax.ShapeDtypeStruct((1, 1), jnp.float32),
        grid_spec=pltpu.PrefetchScalarGridSpec(
            num_scalar_prefetch=0,
            grid=(n // tm,),
            in_specs=[pl.BlockSpec((tm, d), lambda i: (i, 0)),
                      pl.BlockSpec((tm, d), lambda i: (i, 0)),
                      pl.BlockSpec((d, ib_size), lambda i: (0, 0)),
                      pl.BlockSpec((1, ib_size), lambda i: (0, 0))],
            out_specs=pl.BlockSpec((1, 1), lambda i: (0, 0))),
        compiler_params=pltpu.CompilerParams(
            dimension_semantics=("arbitrary",),
            vmem_limit_bytes=_VMEM_LIMIT),
    )(h0, h1, w, b)
    # scale applied in the wrapper (robust to grid / semantics changes)
    return raw[0, 0] / (float(n) * math.log(2.0))


# --------------------------- fused, batch-tiled loss kernel ------------------

def _fused_losses_kernel(all_u_ref, all_p_ref, all_n_ref,
                         ego_u_ref, ego_p_ref, ego_n_ref,
                         ue1_ref, ie1_ref, hu0_ref, hi0_ref,      # z1 (row tiles)
                         ue2_ref, ie2_ref, hu1_ref, hi1_ref,      # z2 (resident)
                         bpr_ref, reg_ref, ssl_u_ref, ssl_i_ref,
                         intra_u_ref, intra_i_ref, *, inv_t, tb):
    i = pl.program_id(0)

    @pl.when(i == 0)
    def _():
        bpr_ref[...] = jnp.zeros_like(bpr_ref)
        reg_ref[...] = jnp.zeros_like(reg_ref)
        ssl_u_ref[...] = jnp.zeros_like(ssl_u_ref)
        ssl_i_ref[...] = jnp.zeros_like(ssl_i_ref)
        intra_u_ref[...] = jnp.zeros_like(intra_u_ref)
        intra_i_ref[...] = jnp.zeros_like(intra_i_ref)

    row0 = i * tb
    if tb % 8 == 0:
        row0 = pl.multiple_of(row0, tb)

    def _norm(z):
        return z * jax.lax.rsqrt(jnp.sum(z * z, axis=1, keepdims=True) + 1e-12)

    def _infonce_partial(z1_ref, z2_ref):
        """sum over this row tile of (logsumexp_j sim/t - pos/t)."""
        z1 = _norm(z1_ref[...])
        z2 = _norm(z2_ref[...])
        z2d = _norm(z2_ref[pl.ds(row0, tb), :])
        pos = jnp.sum(z1 * z2d, axis=1, keepdims=True) * inv_t
        # contract on the last dims of both operands (no transpose of z2)
        ttl = jax.lax.dot_general(z1, z2, (((1,), (1,)), ((), ())),
                                  preferred_element_type=jnp.float32) * inv_t
        m = jnp.max(ttl, axis=1, keepdims=True)
        lse = jnp.log(jnp.sum(jnp.exp(ttl - m), axis=1, keepdims=True)) + m
        return jnp.sum(lse - pos)

    # BPR (sum; wrapper divides by true batch size)
    all_u = all_u_ref[...]
    pos_s = jnp.sum(all_u * all_p_ref[...], axis=1, keepdims=True)
    neg_s = jnp.sum(all_u * all_n_ref[...], axis=1, keepdims=True)
    bpr_ref[...] = bpr_ref[...] + jnp.sum(_softplus(neg_s - pos_s))

    # L2 regularization on the ego embeddings (sum; wrapper scales)
    ego_u = ego_u_ref[...]
    ego_p = ego_p_ref[...]
    ego_n = ego_n_ref[...]
    reg_ref[...] = reg_ref[...] + 0.5 * (jnp.sum(ego_u * ego_u)
                                         + jnp.sum(ego_p * ego_p)
                                         + jnp.sum(ego_n * ego_n))

    ssl_u_ref[...] = ssl_u_ref[...] + _infonce_partial(ue1_ref, ue2_ref)
    ssl_i_ref[...] = ssl_i_ref[...] + _infonce_partial(ie1_ref, ie2_ref)
    intra_u_ref[...] = intra_u_ref[...] + _infonce_partial(hu0_ref, hu1_ref)
    intra_i_ref[...] = intra_i_ref[...] + _infonce_partial(hi0_ref, hi1_ref)


def fused_losses(all_u, all_p, all_n, ego_u, ego_p, ego_n,
                 ue1, ie1, hu0, hi0, ue2, ie2, hu1, hi1,
                 temperature, *, tb=256):
    bsz, d = all_u.shape
    tb = _fit_tile(bsz, tb, 8)
    tiled = pl.BlockSpec((tb, d), lambda i: (i, 0))
    full = pl.BlockSpec((bsz, d), lambda i: (0, 0))
    scalar_out = jax.ShapeDtypeStruct((1, 1), jnp.float32)
    outs = pl.pallas_call(
        functools.partial(_fused_losses_kernel,
                          inv_t=1.0 / float(temperature), tb=tb),
        out_shape=tuple(scalar_out for _ in range(6)),
        grid_spec=pltpu.PrefetchScalarGridSpec(
            num_scalar_prefetch=0,
            grid=(bsz // tb,),
            in_specs=[tiled] * 10 + [full] * 4,
            out_specs=tuple(pl.BlockSpec((1, 1), lambda i: (0, 0))
                            for _ in range(6))),
        compiler_params=pltpu.CompilerParams(
            dimension_semantics=("arbitrary",),
            vmem_limit_bytes=_VMEM_LIMIT),
    )(all_u, all_p, all_n, ego_u, ego_p, ego_n,
      ue1, ie1, hu0, hi0, ue2, ie2, hu1, hi1)
    inv_b = 1.0 / float(bsz)   # TRUE batch size, independent of tile size
    return [o[0, 0] * inv_b for o in outs]


# --------------------------- forward (glue + kernels) ------------------------

def gcrec_forward(params, graph, uu_graphs, ii_graphs, user, positive, negative,
                  *, gcn_layers, ib_size, temperature,
                  reg_lambda, ssl_lambda, ib_lambda, intra_lambda,
                  tile_m=1024, tile_k=2048):
    num_users = params["user_emb"].shape[0]
    ib2 = ib_size // 2

    # aggregate(): bf16 graph streamed once per layer through the tiled matmul
    # TODO(synk): int8 (v5e/v6e) / fp8 (v7x) graph quantization would halve the
    # dominant N^2 HBM stream; requires a separate accuracy validation pass.
    all_emb = jnp.concatenate([params["user_emb"], params["item_emb"]], axis=0)
    graph_bf16 = graph.astype(jnp.bfloat16)
    agg = gcn_aggregate(graph_bf16, all_emb, gcn_layers, tm=tile_m, tk=tile_k)
    user_embeddings = agg[:num_users]
    item_embeddings = agg[num_users:]

    # hetero (autoencoder stand-in) embeddings: G @ (X @ W)
    hete_user = [hete_embed(uu_graphs[i].astype(jnp.bfloat16),
                            params["user_emb"], params["user_ae_w"][i],
                            tm=tile_m, tk=tile_k)
                 for i in range(len(uu_graphs))]
    hete_item = [hete_embed(ii_graphs[i].astype(jnp.bfloat16),
                            params["item_emb"], params["item_ae_w"][i],
                            tm=tile_m, tk=tile_k)
                 for i in range(len(ii_graphs))]

    # information-bottleneck KL (row-tiled compressor + softplus + KL)
    user_kl = compress_kl(hete_user[0], hete_user[1],
                          params["user_comp_w"], params["user_comp_b"], ib2,
                          tm=tile_m)
    item_kl = compress_kl(hete_item[0], hete_item[1],
                          params["item_comp_w"], params["item_comp_b"], ib2,
                          tm=tile_m)
    ib_loss = ib_lambda * (user_kl + item_kl)

    u = user.astype(jnp.int32)
    p = positive.astype(jnp.int32)
    n = negative.astype(jnp.int32)

    # TODO(synk): these O(B*dim) row gathers could move in-kernel via
    # PrefetchScalarGridSpec scalar-prefetched indices; kept in XLA for
    # robustness (the fused loss kernel consumes them in a single launch).
    agg_u = user_embeddings[u]
    hu0 = hete_user[0][u]
    hu1 = hete_user[1][u]
    ego_u = params["user_emb"][u]
    agg_p = item_embeddings[p]
    hi0p = hete_item[0][p]
    hi1p = hete_item[1][p]
    ego_p = params["item_emb"][p]
    agg_n = item_embeddings[n]
    hi0n = hete_item[0][n]
    hi1n = hete_item[1][n]
    ego_n = params["item_emb"][n]

    # cheap O(B*dim) elementwise combinations (kept in XLA; negligible vs. N^2)
    ue1 = agg_u + hu0
    ue2 = agg_u + hu1
    ie1 = agg_p + hi0p
    ie2 = agg_p + hi1p
    # NOTE: reproduces the reference exactly (user branch adds embedding_2 twice)
    all_u = agg_u + 2e-05 * ue2
    all_p = agg_p + 1e-05 * ie1 + 1e-05 * ie2
    all_n = agg_n + 1e-05 * (agg_n + hi0n) + 1e-05 * (agg_n + hi1n)

    bpr_l, reg_l, ssl_u_l, ssl_i_l, intra_u_l, intra_i_l = fused_losses(
        all_u, all_p, all_n, ego_u, ego_p, ego_n,
        ue1, ie1, hu0, hi0p, ue2, ie2, hu1, hi1p, temperature)

    bpr_loss = bpr_l
    reg_loss = reg_lambda * reg_l
    ssl_loss = ssl_lambda * (ssl_u_l + ssl_i_l)
    intra_loss = intra_lambda * (intra_u_l + intra_i_l)

    return [bpr_loss, reg_loss, ssl_loss, intra_loss, ib_loss]


# --------------------------- deterministic setup -----------------------------

def _xavier_uniform(key, shape):
    fan_in, fan_out = shape[0], shape[1]
    a = math.sqrt(6.0 / (fan_in + fan_out))
    return jax.random.uniform(key, shape, jnp.float32, -a, a)


def _sym_norm_bipartite(key, num_users, num_items):
    r = (jax.random.uniform(key, (num_users, num_items)) < 0.3).astype(jnp.float32)
    n = num_users + num_items
    a = jnp.zeros((n, n), jnp.float32)
    a = a.at[:num_users, num_users:].set(r)
    a = a.at[num_users:, :num_users].set(r.T)
    deg = jnp.sum(a, axis=1)
    d_inv_sqrt = jnp.where(deg > 0, 1.0 / jnp.sqrt(deg), 0.0)
    return a * d_inv_sqrt[:, None] * d_inv_sqrt[None, :]


def _row_norm_graph(key, n):
    s = jax.random.uniform(key, (n, n))
    adj = ((s + s.T) * 0.5 > 0.5).astype(jnp.float32) + jnp.eye(n, dtype=jnp.float32)
    deg = jnp.sum(adj, axis=1, keepdims=True)
    return adj / jnp.maximum(deg, 1.0)


if __name__ == "__main__":
    NUM_USERS, NUM_ITEMS = 128, 128     # combined graph N = 256
    DIM, IB_SIZE = 128, 64              # lane-dense feature dims
    GCN_LAYERS = 2
    BATCH = 8
    TEMPERATURE = 0.2
    REG_L, SSL_L, IB_L, INTRA_L = 1e-4, 0.1, 0.01, 0.1

    key = jax.random.PRNGKey(0)
    keys = jax.random.split(key, 16)

    params = {
        "user_emb": _xavier_uniform(keys[0], (NUM_USERS, DIM)),
        "item_emb": _xavier_uniform(keys[1], (NUM_ITEMS, DIM)),
        "user_ae_w": [_xavier_uniform(keys[2], (DIM, DIM)),
                      _xavier_uniform(keys[3], (DIM, DIM))],
        "item_ae_w": [_xavier_uniform(keys[4], (DIM, DIM)),
                      _xavier_uniform(keys[5], (DIM, DIM))],
        "user_comp_w": _xavier_uniform(keys[6], (DIM, IB_SIZE)),
        "user_comp_b": jnp.zeros((1, IB_SIZE), jnp.float32),
        "item_comp_w": _xavier_uniform(keys[7], (DIM, IB_SIZE)),
        "item_comp_b": jnp.zeros((1, IB_SIZE), jnp.float32),
    }

    graph = _sym_norm_bipartite(keys[8], NUM_USERS, NUM_ITEMS)
    uu_graphs = [_row_norm_graph(keys[9], NUM_USERS),
                 _row_norm_graph(keys[10], NUM_USERS)]
    ii_graphs = [_row_norm_graph(keys[11], NUM_ITEMS),
                 _row_norm_graph(keys[12], NUM_ITEMS)]

    user = jax.random.randint(keys[13], (BATCH,), 0, NUM_USERS, jnp.int32)
    positive = jax.random.randint(keys[14], (BATCH,), 0, NUM_ITEMS, jnp.int32)
    negative = jax.random.randint(keys[15], (BATCH,), 0, NUM_ITEMS, jnp.int32)

    losses = gcrec_forward(
        params, graph, uu_graphs, ii_graphs, user, positive, negative,
        gcn_layers=GCN_LAYERS, ib_size=IB_SIZE, temperature=TEMPERATURE,
        reg_lambda=REG_L, ssl_lambda=SSL_L, ib_lambda=IB_L, intra_lambda=INTRA_L)

    losses = jax.block_until_ready(losses)
    print("KERNEL_OK")
</pallas_src>

<mosaic_0001>
module attributes {stable_mosaic.version = 11 : i64} {
  func.func @_matmul_kernel_acc(%arg0: i32, %arg1: i32, %arg2: memref<128x256xbf16, #tpu.memory_space<vmem>>, %arg3: memref<256x128xbf16, #tpu.memory_space<vmem>>, %arg4: memref<128x128xbf16, #tpu.memory_space<vmem>>, %arg5: memref<128x128xf32, #tpu.memory_space<vmem>>) attributes {dimension_semantics = [#tpu.dimension_semantics<parallel>, #tpu.dimension_semantics<arbitrary>], iteration_bounds = array<i64: 2, 1>, scalar_prefetch = 0 : i64, scratch_operands = 1 : i64, tpu.core_type = #tpu.core_type<tc>, window_params = [{transform_indices = @transform_0, window_bounds = array<i64: 128, 256>}, {transform_indices = @transform_1, window_bounds = array<i64: 256, 128>}, {transform_indices = @transform_2, window_bounds = array<i64: 128, 128>}]} {
    %c0_i32 = arith.constant 0 : i32
    %0 = arith.cmpi eq, %arg1, %c0_i32 : i32
    %1 = arith.extui %0 : i1 to i32
    %c0_i32_0 = arith.constant 0 : i32
    %2 = arith.cmpi ne, %1, %c0_i32_0 : i32
    scf.if %2 {
      %cst_10 = arith.constant 0.000000e+00 : f32
      %12 = vector.broadcast %cst_10 : f32 to vector<128x128xf32>
      %c0_11 = arith.constant 0 : index
      %c0_12 = arith.constant 0 : index
      %13 = vector.load %arg5[%c0_11, %c0_12] : memref<128x128xf32, #tpu.memory_space<vmem>>, vector<128x128xf32>
      tpu.vector_store %arg5[%c0_11, %c0_12], %12 {strides = array<i32>} : memref<128x128xf32, #tpu.memory_space<vmem>>, vector<128x128xf32>,
    } else {
    }
    %c0 = arith.constant 0 : index
    %c0_1 = arith.constant 0 : index
    %3 = vector.load %arg5[%c0, %c0_1] : memref<128x128xf32, #tpu.memory_space<vmem>>, vector<128x128xf32>
    %c0_2 = arith.constant 0 : index
    %c0_3 = arith.constant 0 : index
    %4 = vector.load %arg2[%c0_2, %c0_3] : memref<128x256xbf16, #tpu.memory_space<vmem>>, vector<128x256xbf16>
    %c0_4 = arith.constant 0 : index
    %c0_5 = arith.constant 0 : index
    %5 = vector.load %arg3[%c0_4, %c0_5] : memref<256x128xbf16, #tpu.memory_space<vmem>>, vector<256x128xbf16>
    %cst = arith.constant dense<0.000000e+00> : vector<128x128xf32>
    %6 = tpu.matmul %4, %5, %cst {dimension_numbers = #tpu.dot_dimension_numbers<[1], [0], [0], [1], [0, 0, 1, 1], [], []>} : vector<128x256xbf16>, vector<256x128xbf16>, vector<128x128xf32> -> vector<128x128xf32>
    %7 = arith.addf %3, %6 : vector<128x128xf32>
    %c0_6 = arith.constant 0 : index
    %c0_7 = arith.constant 0 : index
    %8 = vector.load %arg5[%c0_6, %c0_7] : memref<128x128xf32, #tpu.memory_space<vmem>>, vector<128x128xf32>
    tpu.vector_store %arg5[%c0_6, %c0_7], %7 {strides = array<i32>} : memref<128x128xf32, #tpu.memory_space<vmem>>, vector<128x128xf32>,
    %c0_i32_8 = arith.constant 0 : i32
    %9 = arith.cmpi eq, %arg1, %c0_i32_8 : i32
    %10 = arith.extui %9 : i1 to i32
    %c0_i32_9 = arith.constant 0 : i32
    %11 = arith.cmpi ne, %10, %c0_i32_9 : i32
    scf.if %11 {
      %c0_10 = arith.constant 0 : index
      %c0_11 = arith.constant 0 : index
      %12 = vector.load %arg5[%c0_10, %c0_11] : memref<128x128xf32, #tpu.memory_space<vmem>>, vector<128x128xf32>
      %13 = arith.truncf %12 : vector<128x128xf32> to vector<128x128xbf16>
      %c0_12 = arith.constant 0 : index
      %c0_13 = arith.constant 0 : index
      %14 = vector.load %arg4[%c0_12, %c0_13] : memref<128x128xbf16, #tpu.memory_space<vmem>>, vector<128x128xbf16>
      tpu.vector_store %arg4[%c0_12, %c0_13], %13 {strides = array<i32>} : memref<128x128xbf16, #tpu.memory_space<vmem>>, vector<128x128xbf16>,
    } else {
    }
    return
  }
  func.func @transform_0(%arg0: i32, %arg1: i32) -> (i32, i32) {
    %c0_i32 = arith.constant 0 : i32
    return %arg0, %arg1 : i32, i32
  }
  func.func @transform_1(%arg0: i32, %arg1: i32) -> (i32, i32) {
    %c0_i32 = arith.constant 0 : i32
    %c0_i32_0 = arith.constant 0 : i32
    return %arg1, %c0_i32 : i32, i32
  }
  func.func @transform_2(%arg0: i32, %arg1: i32) -> (i32, i32) {
    %c0_i32 = arith.constant 0 : i32
    %c0_i32_0 = arith.constant 0 : i32
    return %arg0, %c0_i32 : i32, i32
  }
}

</mosaic_0001>

<bundles_post_ra>
// kernel: tpu_custom_call.1
= control target key start
LH: loop header
LB: loop body
LE: loop exit
PB: predicated region body
PF: predicated region fallthrough
CT: control target
= control target key end

     0   :  { %7 = vsyncpa [#allocation4], 0  ;;  %s1555_s0 = inlined_call_operand.hbm [shape: bf16[256,256], index: 0, kind: input, shape index: {}]   ;;  %s1556_s1 = inlined_call_operand.hbm [shape: bf16[256,128], index: 1, kind: input, shape index: {}]   ;;  %s1557_s2 = inlined_call_operand.hbm [shape: bf16[256,128], index: 2, kind: output, shape index: {}]  }
   0x1   :  { %9 = vsyncpa [#allocation4 + $0x1], 0 }
   0x2   :  { %10 = vsyncpa [#allocation7], 0 }
   0x3   :  { %11 = vsyncpa [#allocation5], 0 }
   0x4   :  { %13 = vsyncpa [#allocation5 + $0x1], 0  ;;  %s1306_s9 = smov 0   ;;  %s1308_s10 = smov 0  }
   0x5   :  { %s1310_s11 = smov 0   ;;  %s1312_s12 = smov 0  }
   0x6   :  { %s1314_s13 = smov 0   ;;  %s1316_s14 = smov 0  }
   0x7 LB: > { %s805_s15 = sadd.s32 4294967295, %s1280_s14   ;;  %s806_s16 = sadd.s32 4294967294, %s1280_s14   ;;  %s1280_s14 = sphi %s1316_s14, %s19_s14   ;;  %s1276_s13 = sphi %s1314_s13, %s1581_s13   ;;  %s1272_s12 = sphi %s1312_s12, %s1580_s12   ;;  %s1268_s11 = sphi %s1310_s11, %s1579_s11   ;;  %s1264_s10 = sphi %s1308_s10, %s1578_s10   ;;  %s1260_s9 = sphi %s1306_s9, %s1577_s9  }
   0x8   : > { %p53_p0 = scmp.ne.s32.totalorder %s1264_s10, %s1260_s9  ;;  %p1340_p1 = scmp.eq.s32.totalorder %s805_s15, 0 }
   0x9   : > { %p1344_p2 = scmp.eq.s32.totalorder %s805_s15, 1  ;;  %p109_p3 = scmp.eq.s32.totalorder %s806_s16, 1 }
   0xa   : > { %s1562_s17 = scalar_select %p1340_p1, 1, 0 }
   0xb   : > { %s1563_s18 = scalar_select %p1344_p2, 1, 0 }
   0xc   : > { %p1350_p4 = por %p1340_p1, %p53_p0  ;;  %p807_p5 = scmp.ge.s32.totalorder %s1280_s14, 1 }
   0xd   : > { %p1355_p6 = por %p109_p3, %p53_p0  ;;  %p116_p7 = scmp.lt.s32.totalorder %s1280_s14, 3 }
   0xe   : > { %s1564_s19 = scalar_select %p1350_p4, 1, 0 }
   0xf   : > { %s1565_s20 = scalar_select %p1355_p6, 1, 0 }
  0x10   : > { %p1360_p8 = pnand %p807_p5, %p116_p7  ;;  %s1282_s22 = smov [#allocation6]  }
  0x11   : > { %s131_s23 = sshll.u32 %s1282_s22, 4  ;;  %s31_s25 = sadd.s32 1, %s1276_s13  ;;  %s132_s23 = int_to_ptr.vmem [resolvable:$true] %s131_s23 }
  0x12   : > { %s1566_s21 = scalar_select %p1360_p8, 1, 0 }
  0x13   : > { %p1025_p9 = pneg %p1360_p8  ;;  %s1136_s28 = scalar_lea.hbm %s1556_s1, 2048 }
  0x14   : > { %p1137_p12 = scmp.ne.s32.totalorder %s1556_s1, %s1136_s28  ;;  %p1143_p5 = scmp.lt.u32.totalorder %s1136_s28, %s1556_s1 }
  0x15   : > { %p1369_p11 = pnand %p1025_p9, %p1340_p1 }
  0x17   : > { %p1138_p13 = pneg %p1369_p11 }
  0x19   : > { %p1139_p0 = pnand %p1138_p13, %p1137_p12 }
  0x1b   : > { %p1140_p3 = pneg %p1139_p0 }
  0x1d   : > { %p1145_p7 = pnand %p1143_p5, %p1140_p3 }
  0x1f   : > { %1148 = shalt.err (!%p1145_p7)
}
  0x20   : > { %s1149_s5 = scalar_lea.vmem %s132_s23, 2048  ;;  %p1157_p1 = scmp.lt.s32.totalorder %s132_s23, %s132_s23 }
  0x21   : > { %p1150_p9 = scmp.ne.s32.totalorder %s132_s23, %s1149_s5  ;;  %p1158_p4 = scmp.lt.s32.totalorder %s1149_s5, %s1149_s5 }
  0x23   : > { %p1152_p10 = pnand %p1150_p9, %p1138_p13  ;;  %p1159_p8 = por %p1158_p4, %p1157_p1 }
  0x25   : > { %p1153_p6 = pneg %p1152_p10 }
  0x27   : > { %p1160_p2 = pnand %p1159_p8, %p1153_p6 }
  0x29   : > { %1163 = shalt.err (!%p1160_p2)
}
  0x2a   : > { %s1283_s6 = smov 64   ;;  %s1284_s7 = smov 4  }
  0x2b   : > { %1028 = dma.hbm_to_vmem [thread:$0]  (!%p1369_p11), %s1556_s1, 2048, %s132_s23, [#allocation7], %s1283_s6, %s1283_s6, %s1284_s7  }
  0x2c   : > { %p33_p1 = scmp.ge.s32.totalorder %s31_s25, 2  ;;  %s40_s16 = sadd.s32 1, %s1268_s11 }
  0x2d   : > { %p47_p2 = scmp.ne.s32.totalorder %s1268_s11, %s1264_s10  ;;  %p48_p4 = scmp.eq.s32.totalorder %s1280_s14, 0 }
  0x2e   : > { %s1583_s25 = smov (%p33_p1, %s31_s25), 0  ;;  %p1569_p8 = scmp.ne.s32.totalorder %s1563_s18, 0 }
  0x2f   : > { %p1396_p6 = por %p48_p4, %p47_p2  ;;  %s35_s24 = ssub.s32 %s1276_s13, %s1583_s25 }
  0x30   : > { %p1402_p10 = por %p1569_p8, %p47_p2  ;;  %p1038_p12 = scmp.lt.s32.totalorder %s1280_s14, 2 }
  0x31   : > { %p38_p11 = scmp.eq.s32.totalorder %s35_s24, 0  ;;  %s145_s23 = sand.u32 1, %s1268_s11  }
  0x32   : > { %s810_s27 = sshll.u32 %s145_s23, 7  ;;  %s872_s29 = sshll.u32 %s1276_s13, 11 }
  0x33   : > { %s1411_s28 = scalar_select %p38_p11, %s1268_s11, %s40_s16  }
  0x34   : > { %s1417_s4 = scalar_lea.hbm %s1555_s0, %s872_s29  ;;  %s149_s18 = scalar_lea.vmem [#allocation3], %s810_s27 }
  0x35   : > { %s159_s5 = sshll.u32 %s149_s18, 4  ;;  %p1423_p13 = pnand %p1038_p12, %p1396_p6  ;;  %s1419_s5 = int_to_ptr.vmem [resolvable:$true] %s159_s5 }
  0x36   : > { %s1427_s7 = scalar_lea.sflag [#allocation4], %s145_s23  ;;  %s1164_s8 = scalar_lea.hbm %s1417_s4, 2048 }
  0x37   : > { %p1165_p0 = scmp.ne.s32.totalorder %s1417_s4, %s1164_s8  ;;  %p1166_p3 = pneg %p1423_p13 }
  0x38   : > { %s1169_s22 = scalar_lea.hbm %s1555_s0, 4096  ;;  %p1170_p9 = scmp.lt.u32.totalorder %s1417_s4, %s1555_s0 }
  0x39   : > { %p1167_p5 = pnand %p1166_p3, %p1165_p0  ;;  %p1171_p1 = scmp.lt.u32.totalorder %s1169_s22, %s1164_s8 }
  0x3a   : > { %p1173_p4 = scmp.lt.u32.totalorder %s1164_s8, %s1417_s4 }
  0x3b   : > { %p1168_p7 = pneg %p1167_p5  ;;  %p1172_p2 = por %p1171_p1, %p1170_p9 }
  0x3d   : > { %p1174_p6 = por %p1173_p4, %p1172_p2 }
  0x3f   : > { %p1175_p8 = pnand %p1174_p6, %p1168_p7 }
  0x41   : > { %1178 = shalt.err (!%p1175_p8)
}
  0x42   : > { %s1179_s23 = scalar_lea.vmem %s1419_s5, 2048  ;;  %s1285_s29 = smov [#allocation3]  }
  0x43   : > { %p1180_p12 = scmp.ne.s32.totalorder %s1419_s5, %s1179_s23  ;;  %s1184_s30 = sshll.u32 %s1285_s29, 4  ;;  %s1185_s30 = int_to_ptr.vmem [resolvable:$false] %s1184_s30 }
  0x44   : > { %s1186_s3 = scalar_lea.vmem %s1185_s30, 4096  ;;  %p1187_p5 = scmp.lt.s32.totalorder %s1419_s5, %s1185_s30 }
  0x45   : > { %p1182_p11 = pnand %p1180_p12, %p1166_p3  ;;  %p1188_p9 = scmp.lt.s32.totalorder %s1186_s3, %s1179_s23 }
  0x47   : > { %p1183_p0 = pneg %p1182_p11  ;;  %p1189_p1 = por %p1188_p9, %p1187_p5 }
  0x49   : > { %p1190_p2 = pnand %p1189_p1, %p1183_p0 }
  0x4b   : > { %1193 = shalt.err (!%p1190_p2)
}
  0x4c   : > { %s1286_s18 = smov 128   ;;  %s1287_s8 = smov 8  }
  0x4d   : > { %1032 = dma.hbm_to_vmem [thread:$0]  (!%p1423_p13), %s1417_s4, 2048, %s1419_s5, %s1427_s7, %s1286_s18, %s1286_s18, %s1287_s8  }
  0x4e   : > { %p1572_p3 = scmp.ne.s32.totalorder %s1566_s21, 0 }
  0x4f   : > { %s1458_s15 = sand.u32 (!%p1572_p3), 1, %s1264_s10   ;;  %p1573_p7 = scmp.ne.s32.totalorder (!%p1572_p3), %s1564_s19, 0 }
  0x50   : > { %171 = sbr.rel (%p1572_p3) target bundleno = 382 (0x17e), region = 28  ;;  %s815_s16 = sshll.u32 (!%p1572_p3), %s1458_s15, 7 }
  0x51   : > { %s174_s22 = scalar_lea.sflag (!%p1572_p3), [#allocation4], %s1458_s15  ;;  %s1462_s24 = scalar_lea.vmem (!%p1572_p3), [#allocation3], %s815_s16 }
  0x57   : > { %1247 = dma.done.wait (%p1573_p7), %s174_s22, 2048  }
  0x58   : > { %1249 = vsyncadd (%p1573_p7), %s174_s22, 4294965248  ;;  %p1574_p13 = scmp.ne.s32.totalorder %s1562_s17, 0 }
  0x5a   : > { %1251 = dma.done.wait (%p1574_p13), [#allocation7], 2048  }
  0x5b   : > { %1253 = vsyncadd (%p1574_p13), [#allocation7], 4294965248  ;;  %v1096_v0 = vld [vmem:[#allocation6 + $0x40] sm:$0xff]   ;;  %v1098_v2 = vld [vmem:[#allocation6 + $0x48] sm:$0xff]   ;;  %s817_s17 = sshll.u32 %s1458_s15, 6  ;;  %s889_s4 = sshll.u32 %s1272_s12, 10 }
  0x5c   : > { %v1097_v1 = vld [vmem:[#allocation6] sm:$0xff]   ;;  %937 = vmatprep.subr.bf16.mxu0 %v1096_v0  ;;  %1001 = vmatprep.subr.bf16.mxu1 %v1096_v0  ;;  %v1099_v3 = vld [vmem:[#allocation6 + $0x8] sm:$0xff]   ;;  %v1100_v4 = vld [vmem:[#allocation6 + $0x50] sm:$0xff]   ;;  %s1489_s19 = scalar_lea.vmem [#allocation8], %s817_s17  ;;  %s1504_s7 = scalar_lea.hbm %s1557_s2, %s889_s4 }
  0x5d   : > { %938 = vmatpush3.bf16.msra.mxu0 %v1097_v1  ;;  %1009 = vmatpush3.bf16.msra.mxu1 %v1097_v1  ;;  %v1101_v5 = vld [vmem:[#allocation6 + $0x10] sm:$0xff]   ;;  %v1102_v6 = vld [vmem:[#allocation6 + $0x58] sm:$0xff]   ;;  %v1104_v8 = vld [vmem:[#allocation6 + $0x60] sm:$0xff]   ;;  %s709_s21 = sshll.u32 %s1489_s19, 4  ;;  %s696_s27 = scalar_lea.sflag [#allocation5], %s1458_s15  ;;  %s1499_s21 = int_to_ptr.vmem [resolvable:$true] %s709_s21 }
  0x5e   : > { %939 = vmatprep.subr.bf16.mxu0 %v1098_v2  ;;  %1002 = vmatprep.subr.bf16.mxu1 %v1098_v2  ;;  %v1103_v7 = vld [vmem:[#allocation6 + $0x18] sm:$0xff]   ;;  %v1105_v9 = vld [vmem:[#allocation6 + $0x20] sm:$0xff]   ;;  %v1106_v10 = vld [vmem:[#allocation6 + $0x68] sm:$0xff]   ;;  %s1194_s12 = scalar_lea.vmem %s1499_s21, 1024  ;;  %s1288_s23 = smov [#allocation8]  }
  0x5f   : > { %v1114_v11 = vld [vmem:[%s1462_s24 + $0x4] ss:$8 sps:$4 sm:$0xff]   ;;  %v1108_v14 = vld [vmem:[#allocation6 + $0x70] sm:$0xff]   ;;  %v1110_v16 = vld [vmem:[#allocation6 + $0x78] sm:$0xff]   ;;  %p1195_p4 = scmp.ne.s32.totalorder %s1499_s21, %s1194_s12  ;;  %s1198_s29 = sshll.u32 %s1288_s23, 4  ;;  %s1199_s29 = int_to_ptr.vmem [resolvable:$false] %s1198_s29 }
  0x60   : > { %v1117_v12 = vld [vmem:[%s1462_s24 + $0x44] ss:$8 sps:$4 sm:$0xff]   ;;  %499 = vmatprep.mubr.bf16.mxu0 %v1114_v11  ;;  %v1109_v15 = vld [vmem:[#allocation6 + $0x30] sm:$0xff]   ;;  %v1111_v17 = vld [vmem:[#allocation6 + $0x38] sm:$0xff]   ;;  %s1200_s30 = scalar_lea.vmem %s1199_s29, 2048  ;;  %p1201_p12 = scmp.lt.s32.totalorder %s1499_s21, %s1199_s29 }
  0x61   : > { %940 = vmatpush3.bf16.msra.mxu0 %v1099_v3  ;;  %1010 = vmatpush3.bf16.msra.mxu1 %v1099_v3  ;;  %v1107_v13 = vld [vmem:[#allocation6 + $0x28] sm:$0xff]   ;;  %v1118_v20 = vld [vmem:[%s1462_s24 + $0x14] ss:$8 sps:$4 sm:$0xff]   ;;  %v1122_v22 = vld [vmem:[%s1462_s24 + $0x10] ss:$8 sps:$4 sm:$0xff]   ;;  %p1196_p6 = pnand %p1195_p4, %p1402_p10  ;;  %p1202_p11 = scmp.lt.s32.totalorder %s1200_s30, %s1194_s12 }
  0x62   : > { %941 = vmatprep.subr.bf16.mxu0 %v1100_v4  ;;  %1003 = vmatprep.subr.bf16.mxu1 %v1100_v4  ;;  %v1112_v18 = vld [vmem:[%s1462_s24] ss:$8 sps:$4 sm:$0xff]   ;;  %v1120_v21 = vld [vmem:[%s1462_s24 + $0x54] ss:$8 sps:$4 sm:$0xff]   ;;  %v1123_v23 = vld [vmem:[%s1462_s24 + $0x50] ss:$8 sps:$4 sm:$0xff]  }
  0x63   : > { %531 = vmatprep.mubr.bf16.mxu1 %v1117_v12  ;;  %v1115_v19 = vld [vmem:[%s1462_s24 + $0x40] ss:$8 sps:$4 sm:$0xff]   ;;  %v1124_v24 = vld [vmem:[%s1462_s24 + $0x24] ss:$8 sps:$4 sm:$0xff]   ;;  %v1130_v28 = vld [vmem:[%s1462_s24 + $0x34] ss:$8 sps:$4 sm:$0xff]   ;;  %p1197_p8 = pneg %p1196_p6  ;;  %p1203_p0 = por %p1202_p11, %p1201_p12 }
  0x64   : > { %v1126_v25 = vld [vmem:[%s1462_s24 + $0x64] ss:$8 sps:$4 sm:$0xff]   ;;  %v1128_v26 = vld [vmem:[%s1462_s24 + $0x20] ss:$8 sps:$4 sm:$0xff]   ;;  %v1132_v29 = vld [vmem:[%s1462_s24 + $0x74] ss:$8 sps:$4 sm:$0xff]  }
  0x65   : > { %942 = vmatpush3.bf16.msra.mxu0 %v1101_v5  ;;  %1011 = vmatpush3.bf16.msra.mxu1 %v1101_v5  ;;  %v1129_v27 = vld [vmem:[%s1462_s24 + $0x60] ss:$8 sps:$4 sm:$0xff]   ;;  %v1134_v30 = vld [vmem:[%s1462_s24 + $0x30] ss:$8 sps:$4 sm:$0xff]   ;;  %p1204_p5 = pnand %p1203_p0, %p1197_p8 }
  0x66   : > { %943 = vmatprep.subr.bf16.mxu0 %v1102_v6  ;;  %1004 = vmatprep.subr.bf16.mxu1 %v1102_v6  ;;  %v1135_v31 = vld [vmem:[%s1462_s24 + $0x70] ss:$8 sps:$4 sm:$0xff]  }
  0x69   : > { %944 = vmatpush3.bf16.msra.mxu0 %v1103_v7  ;;  %1012 = vmatpush3.bf16.msra.mxu1 %v1103_v7 }
  0x6a   : > { %945 = vmatprep.subr.bf16.mxu0 %v1104_v8  ;;  %1005 = vmatprep.subr.bf16.mxu1 %v1104_v8 }
  0x6d   : > { %946 = vmatpush3.bf16.msra.mxu0 %v1105_v9  ;;  %1013 = vmatpush3.bf16.msra.mxu1 %v1105_v9 }
  0x6e   : > { %947 = vmatprep.subr.bf16.mxu0 %v1106_v10  ;;  %1006 = vmatprep.subr.bf16.mxu1 %v1106_v10 }
  0x71   : > { %948 = vmatpush3.bf16.msra.mxu0 %v1107_v13  ;;  %1014 = vmatpush3.bf16.msra.mxu1 %v1107_v13 }
  0x72   : > { %949 = vmatprep.subr.bf16.mxu0 %v1108_v14  ;;  %1007 = vmatprep.subr.bf16.mxu1 %v1108_v14 }
  0x75   : > { %950 = vmatpush3.bf16.msra.mxu0 %v1109_v15  ;;  %1015 = vmatpush3.bf16.msra.mxu1 %v1109_v15 }
  0x76   : > { %951 = vmatprep.subr.bf16.mxu0 %v1110_v16  ;;  %1008 = vmatprep.subr.bf16.mxu1 %v1110_v16 }
  0x79   : > { %952 = vmatpush3.bf16.msra.mxu0 %v1111_v17  ;;  %1016 = vmatpush3.bf16.msra.mxu1 %v1111_v17 }
  0x7c   : > { %500 = vmatmul.mubr.bf16.vlgmr.msra.gmra.mrb[0].mxu0 %v1112_v18  ;;  %532 = vmatmul.mubr.bf16.vlgmr.msra.gmra.mrb[0].mxu1 %v1115_v19 }
  0x7d   : > { %507 = vmatprep.mubr.bf16.mxu0 %v1118_v20  ;;  %539 = vmatprep.mubr.bf16.mxu1 %v1120_v21 }
  0x84   : > { %508 = vmatmul.mubr.bf16.gmra.mrb[4].mxu0 %v1122_v22  ;;  %540 = vmatmul.mubr.bf16.gmra.mrb[4].mxu1 %v1123_v23 }
  0x85   : > { %515 = vmatprep.mubr.bf16.mxu0 %v1124_v24  ;;  %547 = vmatprep.mubr.bf16.mxu1 %v1126_v25 }
  0x8c   : > { %516 = vmatmul.mubr.bf16.gmra.mrb[8].mxu0 %v1128_v26  ;;  %548 = vmatmul.mubr.bf16.gmra.mrb[8].mxu1 %v1129_v27 }
  0x8d   : > { %523 = vmatprep.mubr.bf16.mxu0 %v1130_v28  ;;  %555 = vmatprep.mubr.bf16.mxu1 %v1132_v29 }
  0x94   : > { %524 = vmatmul.mubr.bf16.gmra.mrb[12].mxu0 %v1134_v30  ;;  %556 = vmatmul.mubr.bf16.gmra.mrb[12].mxu1 %v1135_v31 }
 0x14f   : > { %v953_v32 = vpop.f32.mrb[0].mxu0  ;;  %v977_v33 = vpop.f32.mrb[0].mxu1 }
 0x150   : > { %v954_v34 = vpop.f32.mrb[1].mxu0  ;;  %v978_v35 = vpop.f32.mrb[1].mxu1 }
 0x151   : > { %v955_v36 = vadd.f32 %v954_v34, %v953_v32  ;;  %v979_v37 = vadd.f32 %v978_v35, %v977_v33  ;;  %v956_v38 = vpop.f32.mrb[2].mxu0  ;;  %v980_v39 = vpop.f32.mrb[2].mxu1 }
 0x152   : > { %v957_v40 = vpop.f32.mrb[3].mxu0  ;;  %v981_v41 = vpop.f32.mrb[3].mxu1 }
 0x153   : > { %v958_v42 = vadd.f32 %v957_v40, %v956_v38  ;;  %v982_v43 = vadd.f32 %v981_v41, %v980_v39 }
 0x155   : > { %v893_v44 = vpack.c.bf16 %v958_v42, %v955_v36  ;;  %v913_v45 = vpack.c.bf16 %v982_v43, %v979_v37 }
 0x157   : > { %894 = vst [vmem:[%s1489_s19] sm:$0xff] %v893_v44   ;;  %933 = vst [vmem:[%s1489_s19 + $0x20] sm:$0xff] %v913_v45   ;;  %v959_v46 = vpop.f32.mrb[4].mxu0  ;;  %v983_v47 = vpop.f32.mrb[4].mxu1 }
 0x158   : > { %v960_v48 = vpop.f32.mrb[5].mxu0  ;;  %v984_v49 = vpop.f32.mrb[5].mxu1 }
 0x159   : > { %v961_v50 = vadd.f32 %v960_v48, %v959_v46  ;;  %v985_v51 = vadd.f32 %v984_v49, %v983_v47  ;;  %v962_v52 = vpop.f32.mrb[6].mxu0  ;;  %v986_v53 = vpop.f32.mrb[6].mxu1 }
 0x15a   : > { %v963_v54 = vpop.f32.mrb[7].mxu0  ;;  %v987_v55 = vpop.f32.mrb[7].mxu1 }
 0x15b   : > { %v964_v56 = vadd.f32 %v963_v54, %v962_v52  ;;  %v988_v57 = vadd.f32 %v987_v55, %v986_v53 }
 0x15d   : > { %v898_v58 = vpack.c.bf16 %v964_v56, %v961_v50  ;;  %v918_v59 = vpack.c.bf16 %v988_v57, %v985_v51 }
 0x15f   : > { %930 = vst [vmem:[%s1489_s19 + $0x8] sm:$0xff] %v898_v58   ;;  %934 = vst [vmem:[%s1489_s19 + $0x28] sm:$0xff] %v918_v59   ;;  %v965_v60 = vpop.f32.mrb[8].mxu0  ;;  %v989_v61 = vpop.f32.mrb[8].mxu1 }
 0x160   : > { %v966_v62 = vpop.f32.mrb[9].mxu0  ;;  %v990_v63 = vpop.f32.mrb[9].mxu1 }
 0x161   : > { %v967_v0 = vadd.f32 %v966_v62, %v965_v60  ;;  %v991_v1 = vadd.f32 %v990_v63, %v989_v61  ;;  %v968_v2 = vpop.f32.mrb[10].mxu0  ;;  %v992_v3 = vpop.f32.mrb[10].mxu1 }
 0x162   : > { %v969_v4 = vpop.f32.mrb[11].mxu0  ;;  %v993_v5 = vpop.f32.mrb[11].mxu1 }
 0x163   : > { %v970_v6 = vadd.f32 %v969_v4, %v968_v2  ;;  %v994_v7 = vadd.f32 %v993_v5, %v992_v3 }
 0x165   : > { %v903_v8 = vpack.c.bf16 %v970_v6, %v967_v0  ;;  %v923_v9 = vpack.c.bf16 %v994_v7, %v991_v1 }
 0x167   : > { %931 = vst [vmem:[%s1489_s19 + $0x10] sm:$0xff] %v903_v8   ;;  %935 = vst [vmem:[%s1489_s19 + $0x30] sm:$0xff] %v923_v9   ;;  %v971_v10 = vpop.f32.mrb[12].mxu0  ;;  %v995_v11 = vpop.f32.mrb[12].mxu1 }
 0x168   : > { %v972_v12 = vpop.f32.mrb[13].mxu0  ;;  %v996_v13 = vpop.f32.mrb[13].mxu1 }
 0x169   : > { %v973_v14 = vadd.f32 %v972_v12, %v971_v10  ;;  %v997_v15 = vadd.f32 %v996_v13, %v995_v11  ;;  %v974_v16 = vpop.f32.mrb[14].mxu0  ;;  %v998_v17 = vpop.f32.mrb[14].mxu1 }
 0x16a   : > { %v975_v18 = vpop.f32.mrb[15].mxu0  ;;  %v999_v19 = vpop.f32.mrb[15].mxu1 }
 0x16b   : > { %v976_v20 = vadd.f32 %v975_v18, %v974_v16  ;;  %v1000_v21 = vadd.f32 %v999_v19, %v998_v17 }
 0x16d   : > { %v908_v22 = vpack.c.bf16 %v976_v20, %v973_v14  ;;  %v928_v23 = vpack.c.bf16 %v1000_v21, %v997_v15 }
 0x16f   : > { %932 = vst [vmem:[%s1489_s19 + $0x18] sm:$0xff] %v908_v22   ;;  %936 = vst [vmem:[%s1489_s19 + $0x38] sm:$0xff] %v928_v23  }
 0x170   : > { %1207 = shalt.err (!%p1204_p5)
}
 0x171   : > { %s1208_s3 = scalar_lea.hbm %s1504_s7, 1024  ;;  %s1212_s16 = scalar_lea.hbm %s1557_s2, 2048 }
 0x172   : > { %p1209_p9 = scmp.ne.s32.totalorder %s1504_s7, %s1208_s3  ;;  %p1213_p3 = scmp.lt.u32.totalorder %s1504_s7, %s1557_s2 }
 0x173   : > { %p1214_p7 = scmp.lt.u32.totalorder %s1212_s16, %s1208_s3  ;;  %p1216_p4 = scmp.lt.u32.totalorder %s1208_s3, %s1504_s7 }
 0x174   : > { %p1210_p1 = pnand %p1209_p9, %p1402_p10 }
 0x175   : > { %p1215_p13 = por %p1214_p7, %p1213_p3 }
 0x176   : > { %p1211_p2 = pneg %p1210_p1 }
 0x177   : > { %p1217_p6 = por %p1216_p4, %p1215_p13 }
 0x179   : > { %p1218_p8 = pnand %p1217_p6, %p1211_p2 }
 0x17b   : > { %1221 = shalt.err (!%p1218_p8)
}
 0x17c   : > { %s1289_s17 = smov 64   ;;  %s1290_s19 = smov 4  }
 0x17d   : > { %1023 = dma.vmem_to_hbm [thread:$0]  (%p1402_p10), %s1499_s21, 1024, %s1504_s7, %s696_s27, %s1289_s17, %s1289_s17, %s1290_s19  }
 0x17e PF: > { %s724_s4 = sand.u32 1, %s1260_s9   ;;  %p1575_p12 = scmp.ne.s32.totalorder %s1565_s20, 0 }
 0x17f   : > { %p1576_p11 = scmp.ge.s32.totalorder %s1280_s14, 2  ;;  %s725_s5 = scalar_lea.sflag [#allocation5], %s724_s4 }
 0x181   : > { %p1034_p0 = pnand %p1576_p11, %p1575_p12 }
 0x183   : > { %1255 = dma.done.wait (!%p1034_p0), %s725_s5, 1024  }
 0x184   : > { %1257 = vsyncadd (!%p1034_p0), %s725_s5, 4294966272  ;;  %s19_s14 = sadd.s32 1, %s1280_s14   ;;  %s1577_s9 = smov %s1264_s10 }
 0x185   : > { %p16_p5 = scmp.ge.s32.totalorder %s19_s14, 4   ;;  %s1578_s10 = smov %s1268_s11 }
 0x186   : > { %s1579_s11 = smov %s1411_s28  ;;  %s1580_s12 = smov %s1276_s13 }
 0x187   : > { %s1581_s13 = smov %s1583_s25  ;;  %18 = sbr.rel (!%p16_p5) target bundleno = 7 (0x7), region = 86 }
 0x18e   :  { %730 = vsyncpa [#allocation4], 1 }
 0x18f   :  { %732 = vsyncpa [#allocation4 + $0x1], 1 }
 0x190   :  { %733 = vsyncpa [#allocation7], 1 }
 0x191   :  { %734 = vsyncpa [#allocation5], 1 }
 0x192   :  { %736 = vsyncpa [#allocation5 + $0x1], 1 }

</bundles_post_ra>
